<compile_context>
chip_gen: v7x
topology: tpu7x:2x2x1
jax: 0.10.0
libtpu: 0.0.40
codegen_flags: <defaults>
</compile_context>

<pallas_src>
import math
import functools

import jax
import jax.numpy as jnp
from jax import lax
from jax.experimental import pallas as pl
from jax.experimental.pallas import tpu as pltpu


def _layer_norm(x, g, b, eps=1e-5):
    mu = jnp.mean(x, axis=-1, keepdims=True)
    var = jnp.mean((x - mu) ** 2, axis=-1, keepdims=True)
    return (x - mu) * lax.rsqrt(var + eps) * g + b


# --------------------------------------------------------------------------
# Kernel 1: fused QKV projection (q is pre-scaled via the folded weights)
# --------------------------------------------------------------------------
def qkv_proj_kernel(x_ref, wqkv_ref, bqkv_ref, q_ref, k_ref, v_ref):
    E = q_ref.shape[-1]
    qkv = jnp.dot(x_ref[...], wqkv_ref[...],
                  preferred_element_type=jnp.float32) + bqkv_ref[...]
    # lane slices at multiples of E (>=128) -> dense stores
    q_ref[...] = qkv[:, :E].astype(q_ref.dtype)
    k_ref[...] = qkv[:, E:2 * E].astype(k_ref.dtype)
    v_ref[...] = qkv[:, 2 * E:].astype(v_ref.dtype)


# --------------------------------------------------------------------------
# Kernel 2: attention + output projection + residual + LayerNorm1
# --------------------------------------------------------------------------
def attn_ln1_kernel(num_heads, head_dim,
                    x_ref, q_ref, k_ref, v_ref,
                    wo_ref, bo_ref, g1_ref, beta1_ref,
                    h1_ref, ctx_ref):
    q = q_ref[...]                       # (TQ, E) bf16, already scaled
    k = k_ref[...]                       # (S,  E) bf16
    v = v_ref[...]                       # (S,  E) bf16

    nt_dims = (((1,), (1,)), ((), ()))   # contract last dims: Q @ K^T
    for h in range(num_heads):           # static, unrolled
        lo = h * head_dim
        s = lax.dot_general(q[:, lo:lo + head_dim], k[:, lo:lo + head_dim],
                            nt_dims, preferred_element_type=jnp.float32)
        s = s - jnp.max(s, axis=-1, keepdims=True)
        p = jnp.exp(s)
        p = p * pl.reciprocal(jnp.sum(p, axis=-1, keepdims=True), approx=True)
        ctx_ref[:, lo:lo + head_dim] = jnp.dot(
            p.astype(jnp.bfloat16), v[:, lo:lo + head_dim],
            preferred_element_type=jnp.float32).astype(ctx_ref.dtype)

    # single output projection: concat(heads) @ Wo   (ctx scratch is bf16)
    attn = jnp.dot(ctx_ref[...], wo_ref[...],
                   preferred_element_type=jnp.float32) + bo_ref[...]

    # residual + LayerNorm 1 (dropout1 is identity in eval mode)
    h1 = _layer_norm(attn + x_ref[...].astype(jnp.float32),
                     g1_ref[...], beta1_ref[...])
    h1_ref[...] = h1.astype(h1_ref.dtype)


# --------------------------------------------------------------------------
# Kernel 3: FFN (F tiled as a reduction grid axis) + residual + LayerNorm2
# --------------------------------------------------------------------------
def ffn_ln2_kernel(h1_ref, w1_ref, b1_ref, w2_ref, b2_ref, g2_ref, beta2_ref,
                   o_ref, acc_ref):
    f = pl.program_id(2)

    @pl.when(f == 0)
    def _():
        acc_ref[...] = jnp.zeros_like(acc_ref)

    mid = jnp.dot(h1_ref[...], w1_ref[...],
                  preferred_element_type=jnp.float32) + b1_ref[...]
    mid = jnp.maximum(mid, 0.0).astype(jnp.bfloat16)          # fused ReLU
    acc_ref[...] += jnp.dot(mid, w2_ref[...],
                            preferred_element_type=jnp.float32)

    @pl.when(f == pl.num_programs(2) - 1)
    def _():
        ffn = acc_ref[...] + b2_ref[...]
        # residual + LayerNorm 2 (dropout2 is identity in eval mode)
        out = _layer_norm(ffn + h1_ref[...].astype(jnp.float32),
                          g2_ref[...], beta2_ref[...])
        o_ref[...] = out.astype(o_ref.dtype)


# --------------------------------------------------------------------------
# Wrapper
# --------------------------------------------------------------------------
def _const_spec(shape):
    """Grid-invariant block: single-buffered (no pipelining benefit)."""
    index_map = lambda *_: (0,) * len(shape)
    try:
        return pl.BlockSpec(shape, index_map, pipeline_mode=pl.Buffered(1))
    except Exception:                      # older JAX without pipeline_mode
        return pl.BlockSpec(shape, index_map)


def _pick_tile(n, prefs):
    for t in prefs:
        if n % t == 0:
            return t
    return n                               # block covers the full dim


def _hw_budget(seq_len):
    """(vmem_limit_bytes, query_tile) derived from the actual chip."""
    vmem_limit = 48 * 1024 * 1024          # safe on every gen incl. v7x (64 MiB)
    q_prefs = (256, 128)
    try:
        cap = pltpu.get_tpu_info().vmem_capacity_bytes
        vmem_limit = min(int(cap * 0.8), 100 * 1024 * 1024)
        if cap >= 100 * 1024 * 1024:       # v5e / v6e (128 MiB): larger tiles
            q_prefs = (512, 256, 128)
    except Exception:
        pass
    return vmem_limit, _pick_tile(seq_len, q_prefs)


def encoder_forward(x, params, num_heads):
    B, S, E = x.shape
    F = params["w1"].shape[1]
    head_dim = E // num_heads
    assert head_dim * num_heads == E
    bf16 = jnp.bfloat16

    vmem_limit, TQ = _hw_budget(S)
    TP = TQ                                      # projection-kernel tile
    FT = _pick_tile(F, (512, 256))               # FFN hidden-dim tile

    x_b = x.astype(bf16)                         # activations fed in bf16

    # fold the 1/sqrt(hd) attention scale into Wq / bq, fuse QKV weights
    scale = 1.0 / math.sqrt(head_dim)
    wqkv = jnp.concatenate(
        [params["wq"] * scale, params["wk"], params["wv"]], axis=1).astype(bf16)
    bqkv = jnp.concatenate(
        [params["bq"] * scale, params["bk"], params["bv"]], axis=1)   # f32
    wo = params["wo"].astype(bf16)
    w1 = params["w1"].astype(bf16)
    w2 = params["w2"].astype(bf16)

    cparams2 = pltpu.CompilerParams(
        dimension_semantics=("parallel", "parallel"),
        vmem_limit_bytes=vmem_limit)
    cparams3 = pltpu.CompilerParams(
        dimension_semantics=("parallel", "parallel", "arbitrary"),
        vmem_limit_bytes=vmem_limit)

    # ---- 1) fused QKV projection (done once per token, not per q-tile) ----
    q, k, v = pl.pallas_call(
        qkv_proj_kernel,
        out_shape=(jax.ShapeDtypeStruct((B, S, E), bf16),) * 3,
        grid=(B, S // TP),
        in_specs=[
            pl.BlockSpec((None, TP, E), lambda b, t: (b, t, 0)),   # x tile
            _const_spec((E, 3 * E)),                               # wqkv
            _const_spec((1, 3 * E)),                               # bqkv
        ],
        out_specs=(pl.BlockSpec((None, TP, E), lambda b, t: (b, t, 0)),) * 3,
        compiler_params=cparams2,
    )(x_b, wqkv, bqkv)

    # ---- 2) attention + residual + LayerNorm1 ----
    attn_kernel = functools.partial(attn_ln1_kernel, num_heads, head_dim)
    h1 = pl.pallas_call(
        attn_kernel,
        out_shape=jax.ShapeDtypeStruct((B, S, E), bf16),
        grid=(B, S // TQ),
        in_specs=[
            pl.BlockSpec((None, TQ, E), lambda b, t: (b, t, 0)),   # x residual
            pl.BlockSpec((None, TQ, E), lambda b, t: (b, t, 0)),   # q tile
            pl.BlockSpec((None, S, E), lambda b, t: (b, 0, 0)),    # k (full S)
            pl.BlockSpec((None, S, E), lambda b, t: (b, 0, 0)),    # v (full S)
            _const_spec((E, E)),                                   # wo
            _const_spec((1, E)),                                   # bo
            _const_spec((1, E)),                                   # gamma1
            _const_spec((1, E)),                                   # beta1
        ],
        out_specs=pl.BlockSpec((None, TQ, E), lambda b, t: (b, t, 0)),
        scratch_shapes=[pltpu.VMEM((TQ, E), bf16)],                # head ctx
        compiler_params=cparams2,
    )(x_b, q, k, v, wo, params["bo"], params["g1"], params["beta1"])

    # ---- 3) FFN (hidden dim streamed per block) + residual + LayerNorm2 ----
    out = pl.pallas_call(
        ffn_ln2_kernel,
        out_shape=jax.ShapeDtypeStruct((B, S, E), x.dtype),
        grid=(B, S // TQ, F // FT),
        in_specs=[
            pl.BlockSpec((None, TQ, E), lambda b, t, f: (b, t, 0)),  # h1
            pl.BlockSpec((E, FT), lambda b, t, f: (0, f)),           # w1 block
            pl.BlockSpec((1, FT), lambda b, t, f: (0, f)),           # b1 block
            pl.BlockSpec((FT, E), lambda b, t, f: (f, 0)),           # w2 block
            _const_spec((1, E)),                                     # b2
            _const_spec((1, E)),                                     # gamma2
            _const_spec((1, E)),                                     # beta2
        ],
        out_specs=pl.BlockSpec((None, TQ, E), lambda b, t, f: (b, t, 0)),
        scratch_shapes=[pltpu.VMEM((TQ, E), jnp.float32)],           # f32 acc
        compiler_params=cparams3,
    )(h1, w1, params["b1"], w2, params["b2"], params["g2"], params["beta2"])

    return out


# --------------------------------------------------------------------------
# Pure-JAX f32 reference (for verification)
# --------------------------------------------------------------------------
def encoder_reference(x, params, num_heads):
    B, S, E = x.shape
    hd = E // num_heads
    q = x @ params["wq"] + params["bq"]
    k = x @ params["wk"] + params["bk"]
    v = x @ params["wv"] + params["bv"]
    q = q.reshape(B, S, num_heads, hd).transpose(0, 2, 1, 3)
    k = k.reshape(B, S, num_heads, hd).transpose(0, 2, 1, 3)
    v = v.reshape(B, S, num_heads, hd).transpose(0, 2, 1, 3)
    s = jnp.einsum("bhqd,bhkd->bhqk", q, k) / math.sqrt(hd)
    p = jax.nn.softmax(s, axis=-1)
    ctx = jnp.einsum("bhqk,bhkd->bhqd", p, v)
    ctx = ctx.transpose(0, 2, 1, 3).reshape(B, S, E)
    attn_out = ctx @ params["wo"] + params["bo"]
    h1 = _layer_norm(attn_out + x, params["g1"], params["beta1"])
    ff = jnp.maximum(h1 @ params["w1"] + params["b1"], 0.0) @ params["w2"] + params["b2"]
    return _layer_norm(ff + h1, params["g2"], params["beta2"])


def make_params(key, embed_dim, ffn_dim):
    ks = jax.random.split(key, 10)
    scale = 0.05
    return {
        "wq": scale * jax.random.normal(ks[0], (embed_dim, embed_dim), jnp.float32),
        "bq": scale * jax.random.normal(ks[1], (1, embed_dim), jnp.float32),
        "wk": scale * jax.random.normal(ks[2], (embed_dim, embed_dim), jnp.float32),
        "bk": scale * jax.random.normal(ks[3], (1, embed_dim), jnp.float32),
        "wv": scale * jax.random.normal(ks[4], (embed_dim, embed_dim), jnp.float32),
        "bv": scale * jax.random.normal(ks[5], (1, embed_dim), jnp.float32),
        "wo": scale * jax.random.normal(ks[6], (embed_dim, embed_dim), jnp.float32),
        "bo": scale * jax.random.normal(ks[7], (1, embed_dim), jnp.float32),
        "w1": scale * jax.random.normal(ks[8], (embed_dim, ffn_dim), jnp.float32),
        "b1": jnp.zeros((1, ffn_dim), jnp.float32),
        "w2": scale * jax.random.normal(ks[9], (ffn_dim, embed_dim), jnp.float32),
        "b2": jnp.zeros((1, embed_dim), jnp.float32),
        "g1": jnp.ones((1, embed_dim), jnp.float32),
        "beta1": jnp.zeros((1, embed_dim), jnp.float32),
        "g2": jnp.ones((1, embed_dim), jnp.float32),
        "beta2": jnp.zeros((1, embed_dim), jnp.float32),
    }


if __name__ == "__main__":
    # small demo shapes; E is a multiple of 128 so vregs / MXU passes stay dense
    B, S, E, H, F = 2, 8, 128, 4, 256    # batch, seq, embed, heads, ffn_dim
    key = jax.random.PRNGKey(0)
    kx, kp = jax.random.split(key)
    x = jax.random.normal(kx, (B, S, E), jnp.float32)
    params = make_params(kp, E, F)

    out = encoder_forward(x, params, num_heads=H)
    out = jax.block_until_ready(out)

    ref = encoder_reference(x, params, num_heads=H)
    assert out.shape == (B, S, E)
    max_err = float(jnp.max(jnp.abs(out - ref)))
    # bf16 matmul operands / activations + approx softmax reciprocal vs f32 ref
    assert max_err < 5e-2, f"mismatch vs reference: max abs err {max_err}"

    # TODO(synk): dropout layers treated as identity (inference mode); no
    #             attention mask (matches the reference module defaults).
    print("KERNEL_OK")
</pallas_src>

<mosaic_0001>
module attributes {stable_mosaic.version = 11 : i64} {
  func.func @qkv_proj_kernel(%arg0: i32, %arg1: i32, %arg2: memref<1x8x128xbf16, #tpu.memory_space<vmem>>, %arg3: memref<128x384xbf16, #tpu.memory_space<vmem>>, %arg4: memref<1x384xf32, #tpu.memory_space<vmem>>, %arg5: memref<1x8x128xbf16, #tpu.memory_space<vmem>>, %arg6: memref<1x8x128xbf16, #tpu.memory_space<vmem>>, %arg7: memref<1x8x128xbf16, #tpu.memory_space<vmem>>) attributes {dimension_semantics = [#tpu.dimension_semantics<parallel>, #tpu.dimension_semantics<parallel>], iteration_bounds = array<i64: 2, 1>, scalar_prefetch = 0 : i64, scratch_operands = 0 : i64, tpu.core_type = #tpu.core_type<tc>, window_params = [{transform_indices = @transform_0, window_bounds = array<i64: 1, 8, 128>}, {pipeline_mode = #tpu.pipeline_mode<synchronous>, transform_indices = @transform_1, window_bounds = array<i64: 128, 384>}, {pipeline_mode = #tpu.pipeline_mode<synchronous>, transform_indices = @transform_2, window_bounds = array<i64: 1, 384>}, {transform_indices = @transform_3, window_bounds = array<i64: 1, 8, 128>}, {transform_indices = @transform_4, window_bounds = array<i64: 1, 8, 128>}, {transform_indices = @transform_5, window_bounds = array<i64: 1, 8, 128>}]} {
    %c0 = arith.constant 0 : index
    %c0_0 = arith.constant 0 : index
    %c0_1 = arith.constant 0 : index
    %0 = vector.load %arg2[%c0, %c0_0, %c0_1] : memref<1x8x128xbf16, #tpu.memory_space<vmem>>, vector<1x8x128xbf16>
    %1 = vector.shape_cast %0 : vector<1x8x128xbf16> to vector<8x128xbf16>
    %c0_2 = arith.constant 0 : index
    %c0_3 = arith.constant 0 : index
    %2 = vector.load %arg3[%c0_2, %c0_3] : memref<128x384xbf16, #tpu.memory_space<vmem>>, vector<128x384xbf16>
    %cst = arith.constant dense<0.000000e+00> : vector<8x384xf32>
    %3 = tpu.matmul %1, %2, %cst {dimension_numbers = #tpu.dot_dimension_numbers<[1], [0], [0], [1], [0, 0, 1, 1], [], []>} : vector<8x128xbf16>, vector<128x384xbf16>, vector<8x384xf32> -> vector<8x384xf32>
    %c0_4 = arith.constant 0 : index
    %c0_5 = arith.constant 0 : index
    %4 = vector.load %arg4[%c0_4, %c0_5] : memref<1x384xf32, #tpu.memory_space<vmem>>, vector<1x384xf32>
    %5 = vector.broadcast %4 : vector<1x384xf32> to vector<8x384xf32>
    %6 = arith.addf %3, %5 : vector<8x384xf32>
    %7 = vector.extract_strided_slice %6 {offsets = [0, 0], sizes = [8, 128], strides = [1, 1]} : vector<8x384xf32> to vector<8x128xf32>
    %8 = arith.truncf %7 : vector<8x128xf32> to vector<8x128xbf16>
    %c0_6 = arith.constant 0 : index
    %c0_7 = arith.constant 0 : index
    %c0_8 = arith.constant 0 : index
    %9 = vector.load %arg5[%c0_6, %c0_7, %c0_8] : memref<1x8x128xbf16, #tpu.memory_space<vmem>>, vector<1x8x128xbf16>
    %10 = vector.shape_cast %9 : vector<1x8x128xbf16> to vector<8x128xbf16>
    %11 = vector.shape_cast %8 : vector<8x128xbf16> to vector<1x8x128xbf16>
    tpu.vector_store %arg5[%c0_6, %c0_7, %c0_8], %11 {strides = array<i32>} : memref<1x8x128xbf16, #tpu.memory_space<vmem>>, vector<1x8x128xbf16>,
    %12 = vector.extract_strided_slice %6 {offsets = [0, 128], sizes = [8, 128], strides = [1, 1]} : vector<8x384xf32> to vector<8x128xf32>
    %13 = arith.truncf %12 : vector<8x128xf32> to vector<8x128xbf16>
    %c0_9 = arith.constant 0 : index
    %c0_10 = arith.constant 0 : index
    %c0_11 = arith.constant 0 : index
    %14 = vector.load %arg6[%c0_9, %c0_10, %c0_11] : memref<1x8x128xbf16, #tpu.memory_space<vmem>>, vector<1x8x128xbf16>
    %15 = vector.shape_cast %14 : vector<1x8x128xbf16> to vector<8x128xbf16>
    %16 = vector.shape_cast %13 : vector<8x128xbf16> to vector<1x8x128xbf16>
    tpu.vector_store %arg6[%c0_9, %c0_10, %c0_11], %16 {strides = array<i32>} : memref<1x8x128xbf16, #tpu.memory_space<vmem>>, vector<1x8x128xbf16>,
    %17 = vector.extract_strided_slice %6 {offsets = [0, 256], sizes = [8, 128], strides = [1, 1]} : vector<8x384xf32> to vector<8x128xf32>
    %18 = arith.truncf %17 : vector<8x128xf32> to vector<8x128xbf16>
    %c0_12 = arith.constant 0 : index
    %c0_13 = arith.constant 0 : index
    %c0_14 = arith.constant 0 : index
    %19 = vector.load %arg7[%c0_12, %c0_13, %c0_14] : memref<1x8x128xbf16, #tpu.memory_space<vmem>>, vector<1x8x128xbf16>
    %20 = vector.shape_cast %19 : vector<1x8x128xbf16> to vector<8x128xbf16>
    %21 = vector.shape_cast %18 : vector<8x128xbf16> to vector<1x8x128xbf16>
    tpu.vector_store %arg7[%c0_12, %c0_13, %c0_14], %21 {strides = array<i32>} : memref<1x8x128xbf16, #tpu.memory_space<vmem>>, vector<1x8x128xbf16>,
    return
  }
  func.func @transform_0(%arg0: i32, %arg1: i32) -> (i32, i32, i32) {
    %c0_i32 = arith.constant 0 : i32
    %c0_i32_0 = arith.constant 0 : i32
    return %arg0, %arg1, %c0_i32 : i32, i32, i32
  }
  func.func @transform_1(%arg0: i32, %arg1: i32) -> (i32, i32) {
    %c0_i32 = arith.constant 0 : i32
    %c0_i32_0 = arith.constant 0 : i32
    %c0_i32_1 = arith.constant 0 : i32
    return %c0_i32, %c0_i32_0 : i32, i32
  }
  func.func @transform_2(%arg0: i32, %arg1: i32) -> (i32, i32) {
    %c0_i32 = arith.constant 0 : i32
    %c0_i32_0 = arith.constant 0 : i32
    %c0_i32_1 = arith.constant 0 : i32
    return %c0_i32, %c0_i32_0 : i32, i32
  }
  func.func @transform_3(%arg0: i32, %arg1: i32) -> (i32, i32, i32) {
    %c0_i32 = arith.constant 0 : i32
    %c0_i32_0 = arith.constant 0 : i32
    return %arg0, %arg1, %c0_i32 : i32, i32, i32
  }
  func.func @transform_4(%arg0: i32, %arg1: i32) -> (i32, i32, i32) {
    %c0_i32 = arith.constant 0 : i32
    %c0_i32_0 = arith.constant 0 : i32
    return %arg0, %arg1, %c0_i32 : i32, i32, i32
  }
  func.func @transform_5(%arg0: i32, %arg1: i32) -> (i32, i32, i32) {
    %c0_i32 = arith.constant 0 : i32
    %c0_i32_0 = arith.constant 0 : i32
    return %arg0, %arg1, %c0_i32 : i32, i32, i32
  }
}

</mosaic_0001>

<bundles_post_ra>
// kernel: tpu_custom_call.1
= control target key start
LH: loop header
LB: loop body
LE: loop exit
PB: predicated region body
PF: predicated region fallthrough
CT: control target
= control target key end

     0   :  { %s1494_s0 = inlined_call_operand.hbm [shape: bf16[2,8,128], index: 0, kind: input, shape index: {}]   ;;  %s1495_s1 = inlined_call_operand.hbm [shape: bf16[128,384], index: 1, kind: input, shape index: {}]   ;;  %s1496_s2 = inlined_call_operand.vmem [shape: f32[1,384], index: 2, kind: input, shape index: {}]   ;;  %s1497_s3 = inlined_call_operand.hbm [shape: bf16[2,8,128], index: 3, kind: output, shape index: {0}]   ;;  %s1498_s4 = inlined_call_operand.hbm [shape: bf16[2,8,128], index: 4, kind: output, shape index: {1}]   ;;  %s1499_s5 = inlined_call_operand.hbm [shape: bf16[2,8,128], index: 5, kind: output, shape index: {2}]  }
   0x1   :  { %1504 = sst [smem:[#allocation15_spill]] %s1494_s0 }
   0x2   :  { %1505 = sst [smem:[#allocation16_spill]] %s1495_s1 }
   0x3   :  { %11 = vsyncpa [#allocation3], 0 }
   0x4   :  { %13 = vsyncpa [#allocation3 + $0x1], 0 }
   0x5   :  { %14 = vsyncpa [#allocation6], 0 }
   0x6   :  { %15 = vsyncpa [#allocation4], 0 }
   0x7   :  { %17 = vsyncpa [#allocation4 + $0x1], 0 }
   0x8   :  { %18 = vsyncpa [#allocation9], 0 }
   0x9   :  { %20 = vsyncpa [#allocation9 + $0x1], 0  ;;  %s1206_s18 = smov 0   ;;  %s1208_s19 = smov 0  }
   0xa   :  { %s1210_s20 = smov 0   ;;  %s1212_s21 = smov 0  }
   0xb   :  { %s1214_s22 = smov 0   ;;  %s1216_s23 = smov 0  }
   0xc LB: > { %s1237_s24 = sadd.s32 4294967295, %s1164_s23   ;;  %s1503_s25 = sadd.s32 4294967294, %s1164_s23   ;;  %s1164_s23 = sphi %s1216_s23, %s26_s23   ;;  %s1160_s22 = sphi %s1214_s22, %s1528_s22   ;;  %s1156_s21 = sphi %s1212_s21, %s1527_s21   ;;  %s1152_s20 = sphi %s1210_s20, %s1526_s20   ;;  %s1148_s19 = sphi %s1208_s19, %s1525_s19   ;;  %s1144_s18 = sphi %s1206_s18, %s1524_s18  }
   0xd   : > { %p60_p0 = scmp.ne.s32.totalorder %s1148_s19, %s1144_s18  ;;  %p1500_p1 = scmp.eq.s32.totalorder %s1237_s24, 0 }
   0xe   : > { %p134_p3 = scmp.eq.s32.totalorder %s1503_s25, 1  ;;  %p768_p5 = scmp.ge.s32.totalorder %s1164_s23, 1 }
   0xf   : > { %p1248_p4 = por %p1500_p1, %p60_p0  ;;  %p197_p7 = scmp.lt.s32.totalorder %s1164_s23, 3 }
  0x10   : > { %p1253_p6 = por %p134_p3, %p60_p0  ;;  %s1166_s29 = smov [#allocation5]  }
  0x11   : > { %s1506_s26 = scalar_select %p1248_p4, 1, 0 }
  0x12   : > { %s1507_s27 = scalar_select %p1253_p6, 1, 0 }
  0x13   : > { %p1258_p8 = pnand %p768_p5, %p197_p7  ;;  %s209_s30 = sshll.u32 %s1166_s29, 4  ;;  %s210_s30 = int_to_ptr.vmem [resolvable:$true] %s209_s30 }
  0x14   : > { %s38_s7 = sadd.s32 1, %s1160_s22  ;;  %s1510_s1 = sld [smem:[#allocation16_spill]] }
  0x15   : > { %s1508_s28 = scalar_select %p1258_p8, 1, 0 }
  0x16   : > { %p852_p9 = pneg %p1258_p8 }
  0x18   : > { %p1267_p11 = pnand %p852_p9, %p1500_p1 }
  0x1a   : > { %s960_s10 = scalar_lea.hbm %s1510_s1, 3072  ;;  %p962_p13 = pneg %p1267_p11 }
  0x1b   : > { %p961_p12 = scmp.ne.s32.totalorder %s1510_s1, %s960_s10  ;;  %p967_p5 = scmp.lt.u32.totalorder %s960_s10, %s1510_s1 }
  0x1d   : > { %p963_p0 = pnand %p962_p13, %p961_p12 }
  0x1f   : > { %p964_p3 = pneg %p963_p0 }
  0x21   : > { %p969_p7 = pnand %p967_p5, %p964_p3 }
  0x23   : > { %972 = shalt.err (!%p969_p7)
}
  0x24   : > { %s973_s15 = scalar_lea.vmem %s210_s30, 3072  ;;  %p981_p2 = scmp.lt.s32.totalorder %s210_s30, %s210_s30 }
  0x25   : > { %p974_p9 = scmp.ne.s32.totalorder %s210_s30, %s973_s15  ;;  %p982_p6 = scmp.lt.s32.totalorder %s973_s15, %s973_s15 }
  0x27   : > { %p976_p10 = pnand %p974_p9, %p962_p13  ;;  %p983_p4 = por %p982_p6, %p981_p2 }
  0x29   : > { %p977_p1 = pneg %p976_p10 }
  0x2b   : > { %p984_p8 = pnand %p983_p4, %p977_p1 }
  0x2d   : > { %987 = shalt.err (!%p984_p8)
}
  0x2e   : > { %s1167_s16 = smov 192   ;;  %s1168_s17 = smov 12  }
  0x2f   : > { %855 = dma.hbm_to_vmem [thread:$0]  (!%p1267_p11), %s1510_s1, 3072, %s210_s30, [#allocation6], %s1167_s16, %s1167_s16, %s1168_s17  }
  0x30   : > { %p40_p1 = scmp.ge.s32.totalorder %s38_s7, 2  ;;  %s47_s9 = sadd.s32 1, %s1152_s20 }
  0x31   : > { %p54_p2 = scmp.ne.s32.totalorder %s1152_s20, %s1148_s19  ;;  %p55_p4 = scmp.eq.s32.totalorder %s1164_s23, 0 }
  0x32   : > { %s1530_s7 = smov (%p40_p1, %s38_s7), 0  ;;  %p1512_p8 = scmp.eq.s32.totalorder %s1237_s24, 1 }
  0x33   : > { %p1294_p6 = por %p55_p4, %p54_p2  ;;  %s42_s6 = ssub.s32 %s1160_s22, %s1530_s7 }
  0x34   : > { %p1300_p10 = por %p1512_p8, %p54_p2  ;;  %p871_p12 = scmp.lt.s32.totalorder %s1164_s23, 2 }
  0x35   : > { %p45_p11 = scmp.eq.s32.totalorder %s42_s6, 0  ;;  %s226_s30 = sand.u32 1, %s1152_s20  }
  0x36   : > { %s771_s12 = sshll.u32 %s226_s30, 2  ;;  %s772_s14 = sshll.u32 %s1160_s22, 6 }
  0x37   : > { %s1309_s13 = scalar_select %p45_p11, %s1152_s20, %s47_s9  }
  0x38   : > { %s1514_s0 = sld [smem:[#allocation15_spill]]  ;;  %s230_s29 = scalar_lea.vmem [#allocation2], %s771_s12 }
  0x39   : > { %s238_s8 = sshll.u32 %s230_s29, 4  ;;  %p1321_p13 = pnand %p871_p12, %p1294_p6  ;;  %s1317_s8 = int_to_ptr.vmem [resolvable:$true] %s238_s8 }
  0x3a   : > { %s227_s9 = scalar_lea.sflag [#allocation3], %s226_s30 }
  0x3b   : > { %p990_p3 = pneg %p1321_p13 }
  0x3e   : > { %s1315_s17 = scalar_lea.hbm %s1514_s0, %s772_s14  ;;  %s993_s15 = scalar_lea.hbm %s1514_s0, 128 }
  0x3f   : > { %s988_s25 = scalar_lea.hbm %s1315_s17, 64  ;;  %p994_p9 = scmp.lt.u32.totalorder %s1315_s17, %s1514_s0 }
  0x40   : > { %p989_p0 = scmp.ne.s32.totalorder %s1315_s17, %s988_s25  ;;  %p995_p1 = scmp.lt.u32.totalorder %s993_s15, %s988_s25 }
  0x41   : > { %p997_p4 = scmp.lt.u32.totalorder %s988_s25, %s1315_s17 }
  0x42   : > { %p991_p5 = pnand %p990_p3, %p989_p0  ;;  %p996_p2 = por %p995_p1, %p994_p9 }
  0x44   : > { %p992_p7 = pneg %p991_p5  ;;  %p998_p6 = por %p997_p4, %p996_p2 }
  0x46   : > { %p999_p8 = pnand %p998_p6, %p992_p7 }
  0x48   : > { %1002 = shalt.err (!%p999_p8)
}
  0x49   : > { %s1003_s30 = scalar_lea.vmem %s1317_s8, 64  ;;  %s1169_s29 = smov [#allocation2]  }
  0x4a   : > { %p1004_p12 = scmp.ne.s32.totalorder %s1317_s8, %s1003_s30  ;;  %s1008_s12 = sshll.u32 %s1169_s29, 4  ;;  %s1009_s12 = int_to_ptr.vmem [resolvable:$false] %s1008_s12 }
  0x4b   : > { %s1010_s14 = scalar_lea.vmem %s1009_s12, 128  ;;  %p1011_p5 = scmp.lt.s32.totalorder %s1317_s8, %s1009_s12 }
  0x4c   : > { %p1006_p11 = pnand %p1004_p12, %p990_p3  ;;  %p1012_p9 = scmp.lt.s32.totalorder %s1010_s14, %s1003_s30 }
  0x4e   : > { %p1007_p0 = pneg %p1006_p11  ;;  %p1013_p1 = por %p1012_p9, %p1011_p5 }
  0x50   : > { %p1014_p2 = pnand %p1013_p1, %p1007_p0 }
  0x52   : > { %1017 = shalt.err (!%p1014_p2)
}
  0x53   : > { %859 = dma.hbm_to_vmem [thread:$0]  (!%p1321_p13), %s1315_s17, 64, %s1317_s8, %s227_s9  }
  0x54   : > { %p1516_p7 = scmp.ne.s32.totalorder %s1508_s28, 0 }
  0x55   : > { %s1353_s25 = sand.u32 (!%p1516_p7), 1, %s1148_s19   ;;  %p1517_p3 = scmp.ne.s32.totalorder (!%p1516_p7), %s1506_s26, 0 }
  0x56   : > { %247 = sbr.rel (%p1516_p7) target bundleno = 415 (0x19f), region = 32  ;;  %s1356_s15 = sshll.u32 (!%p1516_p7), %s1353_s25, 2 }
  0x57   : > { %s250_s10 = scalar_lea.sflag (!%p1516_p7), [#allocation3], %s1353_s25  ;;  %s253_s16 = scalar_lea.vmem (!%p1516_p7), [#allocation2], %s1356_s15 }
  0x5d   : > { %1127 = dma.done.wait (%p1517_p3), %s250_s10, 64  }
  0x5e   : > { %1129 = vsyncadd (%p1517_p3), %s250_s10, 4294967232  ;;  %p1518_p13 = scmp.eq.s32.totalorder %s1237_s24, 0 }
  0x60   : > { %1131 = dma.done.wait (%p1518_p13), [#allocation6], 3072   ;;  %p1519_p4 = pmov %p1518_p13 }
  0x61   : > { %v1170_v0 = vmov 0.0   ;;  %vm1171_vm0 = vmmov 0   ;;  %v1172_v1 = vmov 0   ;;  %v928_v2 = vld [vmem:[#allocation5 + $0x4] ss:$12 sps:$4 sm:$0xff]   ;;  %v330_v27 = vlaneseq  ;;  %s806_s8 = sshll.u32 %s1156_s21, 6 }
  0x62   : > { %1133 = vsyncadd (%p1519_p4), [#allocation6], 4294964224  ;;  %820 = vmatprep.subr.bf16.mxu1 %v1170_v0  ;;  %836 = vmatprep.mubr.msk.bf16.mxu1 %vm1171_vm0, %v1170_v0  ;;  %v930_v3 = vld [vmem:[#allocation5 + $0x8] ss:$12 sps:$4 sm:$0xff]   ;;  %v931_v4 = vld [vmem:[#allocation5] ss:$12 sps:$4 sm:$0xff]   ;;  %s1381_s21 = scalar_lea.hbm %s1497_s3, %s806_s8  ;;  %s1395_s10 = scalar_lea.hbm %s1499_s5, %s806_s8 }
  0x63   : > { %505 = vmatprep.mubr.bf16.mxu0 %v1172_v1  ;;  %473 = vmatprep.subr.bf16.mxu0 %v928_v2  ;;  %v932_v5 = vld [vmem:[#allocation5 + $0x1c] ss:$12 sps:$4 sm:$0xff]   ;;  %v934_v6 = vld [vmem:[#allocation5 + $0x20] ss:$12 sps:$4 sm:$0xff]   ;;  %v935_v7 = vld [vmem:[#allocation5 + $0x18] ss:$12 sps:$4 sm:$0xff]  }
  0x64   : > { %821 = vmatpush3.bf16.msra.mxu1 %v930_v3  ;;  %474 = vmatpush1.bf16.msra.mxu0 %v931_v4  ;;  %v936_v8 = vld [vmem:[#allocation5 + $0x34] ss:$12 sps:$4 sm:$0xff]   ;;  %v938_v9 = vld [vmem:[#allocation5 + $0x38] ss:$12 sps:$4 sm:$0xff]   ;;  %v939_v10 = vld [vmem:[#allocation5 + $0x30] ss:$12 sps:$4 sm:$0xff]  }
  0x65   : > { %822 = vmatprep.subr.bf16.mxu1 %v1170_v0  ;;  %475 = vmatprep.subr.bf16.mxu0 %v932_v5  ;;  %v940_v11 = vld [vmem:[#allocation5 + $0x4c] ss:$12 sps:$4 sm:$0xff]   ;;  %v942_v12 = vld [vmem:[#allocation5 + $0x50] ss:$12 sps:$4 sm:$0xff]   ;;  %v943_v13 = vld [vmem:[#allocation5 + $0x48] ss:$12 sps:$4 sm:$0xff]  }
  0x66   : > { %v944_v14 = vld [vmem:[#allocation5 + $0x64] ss:$12 sps:$4 sm:$0xff]   ;;  %v946_v15 = vld [vmem:[#allocation5 + $0x68] ss:$12 sps:$4 sm:$0xff]   ;;  %v947_v16 = vld [vmem:[#allocation5 + $0x60] ss:$12 sps:$4 sm:$0xff]  }
  0x67   : > { %v948_v17 = vld [vmem:[#allocation5 + $0x7c] ss:$12 sps:$4 sm:$0xff]   ;;  %v950_v18 = vld [vmem:[#allocation5 + $0x80] ss:$12 sps:$4 sm:$0xff]   ;;  %v951_v19 = vld [vmem:[#allocation5 + $0x78] ss:$12 sps:$4 sm:$0xff]  }
  0x68   : > { %823 = vmatpush3.bf16.msra.mxu1 %v934_v6  ;;  %476 = vmatpush1.bf16.msra.mxu0 %v935_v7  ;;  %v952_v20 = vld [vmem:[#allocation5 + $0x94] ss:$12 sps:$4 sm:$0xff]   ;;  %v954_v21 = vld [vmem:[#allocation5 + $0x98] ss:$12 sps:$4 sm:$0xff]   ;;  %v955_v22 = vld [vmem:[#allocation5 + $0x90] ss:$12 sps:$4 sm:$0xff]  }
  0x69   : > { %824 = vmatprep.subr.bf16.mxu1 %v1170_v0  ;;  %477 = vmatprep.subr.bf16.mxu0 %v936_v8  ;;  %v956_v23 = vld [vmem:[#allocation5 + $0xac] ss:$12 sps:$4 sm:$0xff]   ;;  %v958_v24 = vld [vmem:[#allocation5 + $0xb0] ss:$12 sps:$4 sm:$0xff]   ;;  %v959_v25 = vld [vmem:[#allocation5 + $0xa8] ss:$12 sps:$4 sm:$0xff]  }
  0x6a   : > { %v295_v26 = vld [vmem:[%s253_s16] sm:$0xf]  ;;  %v331_v28 = vshrl.u32 %v330_v27, 7  ;;  %s279_s6 = scalar_lea.vmem [#allocation7], %s1356_s15  ;;  %s286_s30 = scalar_lea.vmem [#allocation8], %s1356_s15 }
  0x6b   : > { %v328_v31 = vld [vmem:[%s1496_s2] sm:$0x7]  ;;  %s585_s9 = sshll.u32 %s279_s6, 4  ;;  %s599_s29 = sshll.u32 %s286_s30, 4  ;;  %s1383_s9 = int_to_ptr.vmem [resolvable:$true] %s585_s9  ;;  %s1390_s29 = int_to_ptr.vmem [resolvable:$true] %s599_s29 }
  0x6c   : > { %825 = vmatpush3.bf16.msra.mxu1 %v938_v9  ;;  %478 = vmatpush1.bf16.msra.mxu0 %v939_v10  ;;  %v340_v29 = vsub.s32 2, %v331_v28  ;;  %v332_v30 = vsub.s32 0, %v331_v28  ;;  %v336_v32 = vsub.s32 1, %v331_v28  ;;  %s293_s12 = scalar_lea.vmem [#allocation10], %s1356_s15  ;;  %s1388_s15 = scalar_lea.hbm %s1498_s4, %s806_s8 }
  0x6d   : > { %826 = vmatprep.subr.bf16.mxu1 %v1170_v0  ;;  %479 = vmatprep.subr.bf16.mxu0 %v940_v11  ;;  %s613_s14 = sshll.u32 %s293_s12, 4  ;;  %s561_s16 = scalar_lea.sflag [#allocation4], %s1353_s25  ;;  %s1397_s14 = int_to_ptr.vmem [resolvable:$true] %s613_s14 }
  0x6e   : > { %v341_v33 = vrot.slane %v328_v31, %v340_v29  ;;  %v333_v34 = vrot.slane %v328_v31, %v332_v30  ;;  %v337_v35 = vrot.slane %v328_v31, %v336_v32  ;;  %s1173_s26 = smov [#allocation7]  }
  0x6f   : > { %s1022_s28 = sshll.u32 %s1173_s26, 4  ;;  %s1023_s28 = int_to_ptr.vmem [resolvable:$false] %s1022_s28 }
  0x70   : > { %827 = vmatpush3.bf16.msra.mxu1 %v942_v12  ;;  %480 = vmatpush1.bf16.msra.mxu0 %v943_v13  ;;  %s1024_s1 = scalar_lea.vmem %s1023_s28, 128  ;;  %p1025_p11 = scmp.lt.s32.totalorder %s1383_s9, %s1023_s28 }
  0x71   : > { %828 = vmatprep.subr.bf16.mxu1 %v1170_v0  ;;  %481 = vmatprep.subr.bf16.mxu0 %v944_v14 }
  0x74   : > { %829 = vmatpush3.bf16.msra.mxu1 %v946_v15  ;;  %482 = vmatpush1.bf16.msra.mxu0 %v947_v16 }
  0x75   : > { %830 = vmatprep.subr.bf16.mxu1 %v1170_v0  ;;  %483 = vmatprep.subr.bf16.mxu0 %v948_v17 }
  0x78   : > { %831 = vmatpush3.bf16.msra.mxu1 %v950_v18  ;;  %484 = vmatpush1.bf16.msra.mxu0 %v951_v19 }
  0x79   : > { %832 = vmatprep.subr.bf16.mxu1 %v1170_v0  ;;  %485 = vmatprep.subr.bf16.mxu0 %v952_v20 }
  0x7c   : > { %833 = vmatpush3.bf16.msra.mxu1 %v954_v21  ;;  %486 = vmatpush1.bf16.msra.mxu0 %v955_v22 }
  0x7d   : > { %834 = vmatprep.subr.bf16.mxu1 %v1170_v0  ;;  %487 = vmatprep.subr.bf16.mxu0 %v956_v23 }
  0x80   : > { %835 = vmatpush3.bf16.msra.mxu1 %v958_v24  ;;  %488 = vmatpush1.bf16.msra.mxu0 %v959_v25 }
  0x83   : > { %837 = vmatmul.mubr.bf16.vlgmr.msra.gmra.mrb[0].mxu1 %v295_v26  ;;  %506 = vmatmul.mubr.bf16.vlgmr.msra.gmra.mrb[0].mxu0 %v295_v26 }
 0x156   : > { %v548_v36 = vpop.f32.mrb[0].mxu1  ;;  %v507_v38 = vpop.f32.mrb[0].mxu0 }
 0x157   : > { %v549_v37 = vadd.f32 %v548_v36, %v341_v33  ;;  %v838_v39 = vpop.f32.mrb[1].mxu1  ;;  %v508_v40 = vadd.f32 %v507_v38, %v333_v34  ;;  %v509_v41 = vpop.f32.mrb[1].mxu0 }
 0x158   : > { %v551_v42 = vpop.f32.mrb[2].mxu1  ;;  %v510_v44 = vadd.f32 %v509_v41, %v337_v35  ;;  %v511_v45 = vpop.f32.mrb[2].mxu0 }
 0x159   : > { %v558_v43 = vpack.c.bf16 %v549_v37, %v549_v37  ;;  %v839_v46 = vpop.f32.mrb[3].mxu1  ;;  %v554_v47 = vpack.c.bf16 %v508_v40, %v508_v40  ;;  %v512_v48 = vpop.f32.mrb[3].mxu0 }
 0x15a   : > { %v556_v49 = vpack.c.bf16 %v510_v44, %v510_v44 }
 0x15b   : > { %559 = vst [vmem:[%s293_s12] sm:$0xf] %v558_v43  ;;  %555 = vst [vmem:[%s279_s6] sm:$0xf] %v554_v47  ;;  %s1018_s12 = scalar_lea.vmem %s1383_s9, 64 }
 0x15c   : > { %557 = vst [vmem:[%s286_s30] sm:$0xf] %v556_v49  ;;  %p1019_p6 = scmp.ne.s32.totalorder %s1383_s9, %s1018_s12  ;;  %p1026_p0 = scmp.lt.s32.totalorder %s1024_s1, %s1018_s12 }
 0x15e   : > { %p1020_p8 = pnand %p1019_p6, %p1300_p10  ;;  %p1027_p5 = por %p1026_p0, %p1025_p11 }
 0x160   : > { %p1021_p12 = pneg %p1020_p8 }
 0x162   : > { %p1028_p9 = pnand %p1027_p5, %p1021_p12 }
 0x164   : > { %1031 = shalt.err (!%p1028_p9)
}
 0x165   : > { %s1032_s0 = scalar_lea.hbm %s1381_s21, 64  ;;  %s1036_s8 = scalar_lea.hbm %s1497_s3, 128 }
 0x166   : > { %p1033_p1 = scmp.ne.s32.totalorder %s1381_s21, %s1032_s0  ;;  %p1037_p3 = scmp.lt.u32.totalorder %s1381_s21, %s1497_s3 }
 0x167   : > { %p1038_p13 = scmp.lt.u32.totalorder %s1036_s8, %s1032_s0  ;;  %p1040_p6 = scmp.lt.u32.totalorder %s1032_s0, %s1381_s21 }
 0x168   : > { %p1034_p2 = pnand %p1033_p1, %p1300_p10 }
 0x169   : > { %p1039_p4 = por %p1038_p13, %p1037_p3 }
 0x16a   : > { %p1035_p7 = pneg %p1034_p2 }
 0x16b   : > { %p1041_p8 = por %p1040_p6, %p1039_p4 }
 0x16d   : > { %p1042_p12 = pnand %p1041_p8, %p1035_p7 }
 0x16f   : > { %1045 = shalt.err (!%p1042_p12)
}
 0x170   : > { %846 = dma.vmem_to_hbm [thread:$0]  (%p1300_p10), %s1383_s9, 64, %s1381_s21, %s561_s16  }
 0x171   : > { %s1520_s1 = sand.u32 1, %s1237_s24   ;;  %s1046_s26 = scalar_lea.vmem %s1390_s29, 64 }
 0x172   : > { %s1423_s12 = scalar_lea.sflag [#allocation9], %s1520_s1  ;;  %p1047_p11 = scmp.ne.s32.totalorder %s1390_s29, %s1046_s26 }
 0x173   : > { %s1174_s28 = smov [#allocation8]  }
 0x174   : > { %p1048_p0 = pnand %p1047_p11, %p1300_p10  ;;  %s1050_s0 = sshll.u32 %s1174_s28, 4  ;;  %s1051_s0 = int_to_ptr.vmem [resolvable:$false] %s1050_s0 }
 0x175   : > { %s1052_s25 = scalar_lea.vmem %s1051_s0, 128  ;;  %p1053_p9 = scmp.lt.s32.totalorder %s1390_s29, %s1051_s0 }
 0x176   : > { %p1049_p5 = pneg %p1048_p0  ;;  %p1054_p1 = scmp.lt.s32.totalorder %s1052_s25, %s1046_s26 }
 0x178   : > { %p1055_p2 = por %p1054_p1, %p1053_p9 }
 0x17a   : > { %p1056_p7 = pnand %p1055_p2, %p1049_p5 }
 0x17c   : > { %1059 = shalt.err (!%p1056_p7)
}
 0x17d   : > { %s1060_s24 = scalar_lea.hbm %s1388_s15, 64  ;;  %s1064_s16 = scalar_lea.hbm %s1498_s4, 128 }
 0x17e   : > { %p1061_p3 = scmp.ne.s32.totalorder %s1388_s15, %s1060_s24  ;;  %p1065_p6 = scmp.lt.u32.totalorder %s1388_s15, %s1498_s4 }
 0x17f   : > { %p1066_p8 = scmp.lt.u32.totalorder %s1064_s16, %s1060_s24  ;;  %p1068_p11 = scmp.lt.u32.totalorder %s1060_s24, %s1388_s15 }
 0x180   : > { %p1062_p13 = pnand %p1061_p3, %p1300_p10 }
 0x181   : > { %p1067_p12 = por %p1066_p8, %p1065_p6 }
 0x182   : > { %p1063_p4 = pneg %p1062_p13 }
 0x183   : > { %p1069_p0 = por %p1068_p11, %p1067_p12 }
 0x185   : > { %p1070_p5 = pnand %p1069_p0, %p1063_p4 }
 0x187   : > { %1073 = shalt.err (!%p1070_p5)
}
 0x188   : > { %847 = dma.vmem_to_hbm [thread:$0]  (%p1300_p10), %s1390_s29, 64, %s1388_s15, %s1423_s12  }
 0x189   : > { %s1074_s6 = scalar_lea.vmem %s1397_s14, 64  ;;  %s1175_s30 = smov [#allocation10]  }
 0x18a   : > { %p1075_p9 = scmp.ne.s32.totalorder %s1397_s14, %s1074_s6  ;;  %s1078_s1 = sshll.u32 %s1175_s30, 4  ;;  %s1079_s1 = int_to_ptr.vmem [resolvable:$false] %s1078_s1 }
 0x18b   : > { %s1080_s26 = scalar_lea.vmem %s1079_s1, 128  ;;  %p1081_p7 = scmp.lt.s32.totalorder %s1397_s14, %s1079_s1 }
 0x18c   : > { %p1076_p1 = pnand %p1075_p9, %p1300_p10  ;;  %p1082_p3 = scmp.lt.s32.totalorder %s1080_s26, %s1074_s6 }
 0x18e   : > { %p1077_p2 = pneg %p1076_p1  ;;  %p1083_p13 = por %p1082_p3, %p1081_p7 }
 0x190   : > { %p1084_p4 = pnand %p1083_p13, %p1077_p2 }
 0x192   : > { %1087 = shalt.err (!%p1084_p4)
}
 0x193   : > { %s1088_s29 = scalar_lea.hbm %s1395_s10, 64  ;;  %s1092_s0 = scalar_lea.hbm %s1499_s5, 128 }
 0x194   : > { %p1089_p6 = scmp.ne.s32.totalorder %s1395_s10, %s1088_s29  ;;  %p1093_p11 = scmp.lt.u32.totalorder %s1395_s10, %s1499_s5 }
 0x195   : > { %p1094_p0 = scmp.lt.u32.totalorder %s1092_s0, %s1088_s29  ;;  %p1096_p9 = scmp.lt.u32.totalorder %s1088_s29, %s1395_s10 }
 0x196   : > { %p1090_p8 = pnand %p1089_p6, %p1300_p10 }
 0x197   : > { %p1095_p5 = por %p1094_p0, %p1093_p11 }
 0x198   : > { %p1091_p12 = pneg %p1090_p8 }
 0x199   : > { %p1097_p1 = por %p1096_p9, %p1095_p5 }
 0x19b   : > { %p1098_p2 = pnand %p1097_p1, %p1091_p12 }
 0x19d   : > { %1101 = shalt.err (!%p1098_p2)
}
 0x19e   : > { %848 = dma.vmem_to_hbm [thread:$0]  (%p1300_p10), %s1397_s14, 64, %s1395_s10, %s1423_s12  }
 0x19f PF: > { %s625_s9 = sand.u32 1, %s1144_s18   ;;  %p1521_p7 = scmp.ne.s32.totalorder %s1507_s27, 0 }
 0x1a0   : > { %p1522_p3 = scmp.ge.s32.totalorder %s1164_s23, 2  ;;  %s626_s21 = scalar_lea.sflag [#allocation4], %s625_s9 }
 0x1a2   : > { %p861_p13 = pnand %p1522_p3, %p1521_p7 }
 0x1a4   : > { %1135 = dma.done.wait (!%p861_p13), %s626_s21, 64  }
 0x1a5   : > { %1137 = vsyncadd (!%p861_p13), %s626_s21, 4294967232  ;;  %s1523_s16 = sadd.s32 4294967294, %s1164_s23  }
 0x1a6   : > { %s634_s17 = sand.u32 1, %s1523_s16  }
 0x1a7   : > { %s635_s8 = scalar_lea.sflag [#allocation9], %s634_s17 }
 0x1a8   : > { %1139 = dma.done.wait (!%p861_p13), %s635_s8, 128  }
 0x1a9   : > { %1141 = vsyncadd (!%p861_p13), %s635_s8, 4294967168  ;;  %s26_s23 = sadd.s32 1, %s1164_s23   ;;  %s1524_s18 = smov %s1148_s19 }
 0x1aa   : > { %p23_p10 = scmp.ge.s32.totalorder %s26_s23, 4   ;;  %s1525_s19 = smov %s1152_s20 }
 0x1ab   : > { %s1526_s20 = smov %s1309_s13  ;;  %s1527_s21 = smov %s1160_s22 }
 0x1ac   : > { %s1528_s22 = smov %s1530_s7  ;;  %25 = sbr.rel (!%p23_p10) target bundleno = 12 (0xc), region = 113 }
 0x1b3   :  { %649 = vsyncpa [#allocation3], 1 }
 0x1b4   :  { %651 = vsyncpa [#allocation3 + $0x1], 1 }
 0x1b5   :  { %652 = vsyncpa [#allocation6], 1 }
 0x1b6   :  { %653 = vsyncpa [#allocation4], 1 }
 0x1b7   :  { %655 = vsyncpa [#allocation4 + $0x1], 1 }
 0x1b8   :  { %656 = vsyncpa [#allocation9], 1 }
 0x1b9   :  { %658 = vsyncpa [#allocation9 + $0x1], 1 }

</bundles_post_ra>
